<compile_context>
chip_gen: v7x
topology: tpu7x:2x2x1
jax: 0.10.0
libtpu: 0.0.40
codegen_flags: <defaults>
</compile_context>

<pallas_src>
import functools

import jax
import jax.numpy as jnp
from jax import lax
from jax.experimental import pallas as pl
from jax.experimental.pallas import tpu as pltpu

LN_EPS = 1e-5  # PyTorch nn.LayerNorm default


def _layernorm(x, gamma, beta):
    mu = jnp.mean(x, axis=-1, keepdims=True)
    var = jnp.mean((x - mu) * (x - mu), axis=-1, keepdims=True)
    return (x - mu) * lax.rsqrt(var + LN_EPS) * gamma + beta


def _gelu(x):
    # TODO(synk): torch nn.GELU() is the exact erf form; the tanh approximation is
    # used here for EUP routing (numerics differ by ~1e-3 relative at most).
    return jax.nn.gelu(x, approximate=True)


def gmlp_kernel(x_ref,                      # (BT, N, D_MODEL) f32
                g1_ref, be1_ref,            # (1, D_MODEL) outer LayerNorm
                w1v_ref, b1v_ref,           # (D_MODEL, D_HALF) bf16, (1, D_HALF) f32
                g2_ref, be2_ref,            # (1, D_HALF) SGU LayerNorm
                wsp_ref,                    # (N, N) bf16, causal mask pre-applied
                w1u_ref, b1u_ref,           # (D_MODEL, T) bf16, (1, T) f32  [k-tiled]
                w2_ref, b2_ref,             # (T, D_MODEL) bf16, (1, D_MODEL) f32
                out_ref,                    # (BT, N, D_MODEL) f32
                xn_s,                       # (BT*N, D_MODEL) bf16 scratch
                vs_s,                       # (BT*N, D_HALF)  f32  scratch
                acc_s,                      # (BT*N, D_MODEL) f32  scratch
                *, bt, n):
    k = pl.program_id(1)
    tile = w1u_ref.shape[1]

    @pl.when(k == 0)
    def _prologue():
        x = x_ref[...].reshape(bt * n, -1)
        xn_bf = _layernorm(x, g1_ref[...], be1_ref[...]).astype(jnp.bfloat16)
        xn_s[...] = xn_bf

        # v half of proj_1 (full width: the SGU LayerNorm needs mean/var over all
        # of d_half, so it cannot be channel-tiled) + spatial gating matmul.
        v = _gelu(jnp.dot(xn_bf, w1v_ref[...],
                          preferred_element_type=jnp.float32) + b1v_ref[...])
        vn = _layernorm(v, g2_ref[...], be2_ref[...]).astype(jnp.bfloat16)
        w_sp = wsp_ref[...]
        for i in range(bt):                           # static, tiny trip count
            vs_s[i * n:(i + 1) * n, :] = jnp.dot(
                w_sp, vn[i * n:(i + 1) * n, :],
                preferred_element_type=jnp.float32)

        acc_s[...] = jnp.zeros_like(acc_s)

    # u half for this d_half tile, gating, and proj_2 accumulation.
    u = _gelu(jnp.dot(xn_s[...], w1u_ref[...],
                      preferred_element_type=jnp.float32)
              + b1u_ref[...]).astype(jnp.bfloat16)          # bf16 right after GELU
    start = pl.multiple_of(k * tile, tile)
    gated = (u * vs_s[:, pl.ds(start, tile)]).astype(jnp.bfloat16)
    acc_s[...] += jnp.dot(gated, w2_ref[...], preferred_element_type=jnp.float32)

    @pl.when(k == pl.num_programs(1) - 1)
    def _epilogue():
        out = acc_s[...] + b2_ref[...] + x_ref[...].reshape(bt * n, -1)
        out_ref[...] = out.reshape(bt, n, -1).astype(out_ref.dtype)


def _pick_batch_tile(b, n, target_rows=256):
    # Fuse batch elements into the matmul rows when N is small (fills the
    # 256-wide v6e/v7x MXU and amortizes per-grid-step overhead).
    bt = max(1, min(b, target_rows // max(n, 1)))
    while b % bt:
        bt -= 1
    return bt


def _pick_dh_tile(d_half, max_tile=512):
    if d_half <= max_tile:
        return d_half
    for t in range(max_tile, 127, -128):
        if d_half % t == 0:
            return t
    return d_half  # no lane-aligned divisor — fall back to a single tile


def _vmem_limit_bytes(bt, n, d_model, d_half, tile):
    f32, bf16 = 4, 2
    rows = bt * n
    act = 2 * 2 * rows * d_model * f32                              # x + out, double-buffered
    const = (d_model * d_half + n * n) * bf16 + (3 * d_model + 3 * d_half) * f32
    tiles = 2 * (2 * d_model * tile * bf16 + tile * f32)            # w1_u/w2/b1_u (dbl-buf)
    scratch = rows * (d_model * bf16 + d_half * f32 + d_model * f32)
    inter = rows * d_half * (f32 + bf16) + rows * tile * (f32 + 2 * bf16)
    total = act + const + tiles + scratch + inter
    try:
        cap = pltpu.get_tpu_info().vmem_capacity_bytes
    except Exception:
        cap = 64 * 1024 * 1024                                      # conservative fallback
    # 2x headroom for compiler temporaries; clamp to ~87% of physical VMEM so the
    # limit is generation-aware (128 MiB on v5e/v6e, 64 MiB per TC on v7x).
    return int(min(max(2 * total, 8 * 1024 * 1024), int(0.875 * cap)))


def gmlp_block(x, params, *, causal):
    """x: (B, N, D_MODEL) float32.  Requires n <= seq_len (m == n, no padding)."""
    b, n, d_model = x.shape
    d_half = params["w1_u"].shape[1]
    d_ffn = 2 * d_half
    seq_len = params["w_sp"].shape[0]

    # TODO(synk): the n > seq_len truncate-then-F.pad path of the torch SGU is not
    # implemented; we assume n <= seq_len (guaranteed upstream).
    assert n <= seq_len, "n > seq_len path not implemented"

    w_sp = params["w_sp"] if n == seq_len else params["w_sp"][:n, :n]
    if causal:
        # Pre-mask ONCE in the wrapper (grid-invariant): keep the lower triangle
        # (row >= col), exactly matching the torch masked_fill.
        w_sp = jnp.where(jnp.tril(jnp.ones((n, n), dtype=bool)),
                         w_sp, jnp.zeros_like(w_sp))

    bt = _pick_batch_tile(b, n)
    tile = _pick_dh_tile(d_half)
    n_k = d_half // tile

    def batch_spec():
        return pl.BlockSpec((bt, n, d_model), lambda bi, k: (bi, 0, 0))

    def const_spec(shape):
        # Grid-invariant operand: fetched once, single VMEM buffer.
        return pl.BlockSpec(shape, lambda bi, k: (0,) * len(shape),
                            pipeline_mode=pl.Buffered(1))

    grid_spec = pltpu.PrefetchScalarGridSpec(
        num_scalar_prefetch=0,
        grid=(b // bt, n_k),
        in_specs=[
            batch_spec(),                                       # x
            const_spec((1, d_model)),                           # ln1 gamma
            const_spec((1, d_model)),                           # ln1 beta
            const_spec((d_model, d_half)),                      # w1_v (full, bf16)
            const_spec((1, d_half)),                            # b1_v
            const_spec((1, d_half)),                            # ln2 gamma
            const_spec((1, d_half)),                            # ln2 beta
            const_spec((n, n)),                                 # spatial weight (pre-masked)
            pl.BlockSpec((d_model, tile), lambda bi, k: (0, k)),  # w1_u tile
            pl.BlockSpec((1, tile), lambda bi, k: (0, k)),        # b1_u tile
            pl.BlockSpec((tile, d_model), lambda bi, k: (k, 0)),  # w2 tile
            const_spec((1, d_model)),                           # b2
        ],
        out_specs=batch_spec(),
        scratch_shapes=[
            pltpu.VMEM((bt * n, d_model), jnp.bfloat16),        # cached LayerNorm(x)
            pltpu.VMEM((bt * n, d_half), jnp.float32),          # spatially-gated v
            pltpu.VMEM((bt * n, d_model), jnp.float32),         # proj_2 accumulator
        ],
    )

    flops = 2 * b * n * (d_model * d_ffn + n * d_half + d_half * d_model)
    transcendentals = b * n * d_ffn                             # tanh-GELU on h
    bytes_accessed = int(
        2 * x.size * x.dtype.itemsize
        + sum(int(v.size) * v.dtype.itemsize for v in params.values()))
    cost = pl.CostEstimate(flops=int(flops),
                           transcendentals=int(transcendentals),
                           bytes_accessed=bytes_accessed)

    # TODO(synk): on v7x with B // bt odd (or == 1) one TensorCore idles; a second
    # "parallel" axis over d_model output columns would restore megacore balance.
    # TODO(synk): on v5e a bf16 activation in/out would halve the only HBM traffic
    # that scales with B*N*D, if the surrounding network tolerates it.
    return pl.pallas_call(
        functools.partial(gmlp_kernel, bt=bt, n=n),
        out_shape=jax.ShapeDtypeStruct((b, n, d_model), jnp.float32),
        grid_spec=grid_spec,
        compiler_params=pltpu.CompilerParams(
            dimension_semantics=("parallel", "arbitrary"),
            vmem_limit_bytes=_vmem_limit_bytes(bt, n, d_model, d_half, tile),
        ),
        cost_estimate=cost,
    )(
        x,
        params["ln1_g"], params["ln1_b"],
        params["w1_v"], params["b1_v"],
        params["ln2_g"], params["ln2_b"],
        w_sp,
        params["w1_u"], params["b1_u"],
        params["w2"], params["b2"],
    )


def init_params(key, d_model, d_ffn, seq_len):
    d_half = d_ffn // 2
    k1, k2, k3, k4, k5 = jax.random.split(key, 5)
    scale = 0.05
    w1 = scale * jax.random.normal(k1, (d_model, d_ffn), jnp.float32)
    b1 = scale * jax.random.normal(k2, (1, d_ffn), jnp.float32)
    return {
        # LayerNorm params, stored as (1, D) rows (lane-friendly).
        "ln1_g": jnp.ones((1, d_model), jnp.float32),
        "ln1_b": jnp.zeros((1, d_model), jnp.float32),
        "ln2_g": jnp.ones((1, d_half), jnp.float32),
        "ln2_b": jnp.zeros((1, d_half), jnp.float32),
        # proj_1: Linear(d_model, d_ffn); stored transposed and split into the
        # u / v halves (lane-aligned when d_half % 128 == 0).  bf16 MXU operands.
        "w1_u": w1[:, :d_half].astype(jnp.bfloat16),
        "w1_v": w1[:, d_half:].astype(jnp.bfloat16),
        "b1_u": b1[:, :d_half],
        "b1_v": b1[:, d_half:],
        # SGU proj: Linear(seq_len, seq_len).  The torch forward uses only .weight
        # (proj.bias is never applied), so only the raw weight is needed.
        "w_sp": (scale * jax.random.normal(k3, (seq_len, seq_len),
                                           jnp.float32)).astype(jnp.bfloat16),
        # proj_2: Linear(d_ffn // 2, d_model); stored transposed, bf16.
        "w2": (scale * jax.random.normal(k4, (d_half, d_model),
                                         jnp.float32)).astype(jnp.bfloat16),
        "b2": scale * jax.random.normal(k5, (1, d_model), jnp.float32),
    }


def gmlp_ref(x, params, *, causal):
    """Pure-JAX reference with the same numerics policy (bf16 MXU, f32 accumulate)."""
    n = x.shape[1]
    w = params["w_sp"][:n, :n]
    if causal:
        w = jnp.where(jnp.tril(jnp.ones((n, n), dtype=bool)), w, jnp.zeros_like(w))
    xn = _layernorm(x, params["ln1_g"], params["ln1_b"]).astype(jnp.bfloat16)
    u = _gelu(jnp.einsum("bnd,df->bnf", xn, params["w1_u"],
                         preferred_element_type=jnp.float32)
              + params["b1_u"]).astype(jnp.bfloat16)
    v = _gelu(jnp.einsum("bnd,df->bnf", xn, params["w1_v"],
                         preferred_element_type=jnp.float32) + params["b1_v"])
    vn = _layernorm(v, params["ln2_g"], params["ln2_b"]).astype(jnp.bfloat16)
    vs = jnp.einsum("mn,bnd->bmd", w, vn, preferred_element_type=jnp.float32)
    gated = (u * vs).astype(jnp.bfloat16)
    out = jnp.einsum("bnd,dm->bnm", gated, params["w2"],
                     preferred_element_type=jnp.float32) + params["b2"]
    return out + x


if __name__ == "__main__":
    # Small but lane-dense shapes: d_model and d_half are multiples of 128,
    # seq is a multiple of 8 (sublane), so no masked partial stores / relayouts.
    B, SEQ_LEN, D_MODEL, D_FFN = 2, 8, 128, 256
    CAUSAL = True

    key = jax.random.PRNGKey(0)
    kx, kp = jax.random.split(key)
    x = jax.random.normal(kx, (B, SEQ_LEN, D_MODEL), jnp.float32)
    params = init_params(kp, D_MODEL, D_FFN, SEQ_LEN)

    out = jax.block_until_ready(gmlp_block(x, params, causal=CAUSAL))

    ref = gmlp_ref(x, params, causal=CAUSAL)
    assert out.shape == (B, SEQ_LEN, D_MODEL)
    assert jnp.allclose(out, ref, atol=2e-3, rtol=2e-3), "mismatch vs reference"

    print("KERNEL_OK")
</pallas_src>

<mosaic_0001>
module attributes {stable_mosaic.version = 11 : i64} {
  func.func @gmlp_kernel(%arg0: i32, %arg1: i32, %arg2: memref<2x8x128xf32, #tpu.memory_space<vmem>>, %arg3: memref<1x128xf32, #tpu.memory_space<vmem>>, %arg4: memref<1x128xf32, #tpu.memory_space<vmem>>, %arg5: memref<128x128xbf16, #tpu.memory_space<vmem>>, %arg6: memref<1x128xf32, #tpu.memory_space<vmem>>, %arg7: memref<1x128xf32, #tpu.memory_space<vmem>>, %arg8: memref<1x128xf32, #tpu.memory_space<vmem>>, %arg9: memref<8x8xbf16, #tpu.memory_space<vmem>>, %arg10: memref<128x128xbf16, #tpu.memory_space<vmem>>, %arg11: memref<1x128xf32, #tpu.memory_space<vmem>>, %arg12: memref<128x128xbf16, #tpu.memory_space<vmem>>, %arg13: memref<1x128xf32, #tpu.memory_space<vmem>>, %arg14: memref<2x8x128xf32, #tpu.memory_space<vmem>>, %arg15: memref<16x128xbf16, #tpu.memory_space<vmem>>, %arg16: memref<16x128xf32, #tpu.memory_space<vmem>>, %arg17: memref<16x128xf32, #tpu.memory_space<vmem>>) attributes {dimension_semantics = [#tpu.dimension_semantics<parallel>, #tpu.dimension_semantics<arbitrary>], iteration_bounds = array<i64: 1, 1>, scalar_prefetch = 0 : i64, scratch_operands = 3 : i64, tpu.core_type = #tpu.core_type<tc>, window_params = [{transform_indices = @transform_0, window_bounds = array<i64: 2, 8, 128>}, {pipeline_mode = #tpu.pipeline_mode<synchronous>, transform_indices = @transform_1, window_bounds = array<i64: 1, 128>}, {pipeline_mode = #tpu.pipeline_mode<synchronous>, transform_indices = @transform_2, window_bounds = array<i64: 1, 128>}, {pipeline_mode = #tpu.pipeline_mode<synchronous>, transform_indices = @transform_3, window_bounds = array<i64: 128, 128>}, {pipeline_mode = #tpu.pipeline_mode<synchronous>, transform_indices = @transform_4, window_bounds = array<i64: 1, 128>}, {pipeline_mode = #tpu.pipeline_mode<synchronous>, transform_indices = @transform_5, window_bounds = array<i64: 1, 128>}, {pipeline_mode = #tpu.pipeline_mode<synchronous>, transform_indices = @transform_6, window_bounds = array<i64: 1, 128>}, {pipeline_mode = #tpu.pipeline_mode<synchronous>, transform_indices = @transform_7, window_bounds = array<i64: 8, 8>}, {transform_indices = @transform_8, window_bounds = array<i64: 128, 128>}, {transform_indices = @transform_9, window_bounds = array<i64: 1, 128>}, {transform_indices = @transform_10, window_bounds = array<i64: 128, 128>}, {pipeline_mode = #tpu.pipeline_mode<synchronous>, transform_indices = @transform_11, window_bounds = array<i64: 1, 128>}, {transform_indices = @transform_12, window_bounds = array<i64: 2, 8, 128>}]} {
    %c0_i32 = arith.constant 0 : i32
    %0 = arith.cmpi eq, %arg1, %c0_i32 : i32
    %1 = arith.extui %0 : i1 to i32
    %c0_i32_0 = arith.constant 0 : i32
    %2 = arith.cmpi ne, %1, %c0_i32_0 : i32
    scf.if %2 {
      %c0_20 = arith.constant 0 : index
      %c0_21 = arith.constant 0 : index
      %c0_22 = arith.constant 0 : index
      %38 = vector.load %arg2[%c0_20, %c0_21, %c0_22] : memref<2x8x128xf32, #tpu.memory_space<vmem>>, vector<2x8x128xf32>
      %39 = vector.shape_cast %38 : vector<2x8x128xf32> to vector<16x128xf32>
      %c0_23 = arith.constant 0 : index
      %c0_24 = arith.constant 0 : index
      %40 = vector.load %arg3[%c0_23, %c0_24] : memref<1x128xf32, #tpu.memory_space<vmem>>, vector<1x128xf32>
      %c0_25 = arith.constant 0 : index
      %c0_26 = arith.constant 0 : index
      %41 = vector.load %arg4[%c0_25, %c0_26] : memref<1x128xf32, #tpu.memory_space<vmem>>, vector<1x128xf32>
      %cst_27 = arith.constant dense<0.000000e+00> : vector<16xf32>
      %42 = vector.multi_reduction <add>, %39, %cst_27 [1] : vector<16x128xf32> to vector<16xf32>
      %43 = vector.shape_cast %42 : vector<16xf32> to vector<16x1xf32>
      %cst_28 = arith.constant 1.280000e+02 : f32
      %44 = vector.broadcast %cst_28 : f32 to vector<16x1xf32>
      %45 = arith.divf %43, %44 : vector<16x1xf32>
      %46 = vector.broadcast %45 : vector<16x1xf32> to vector<16x128xf32>
      %47 = arith.subf %39, %46 : vector<16x128xf32>
      %48 = vector.broadcast %45 : vector<16x1xf32> to vector<16x128xf32>
      %49 = arith.subf %39, %48 : vector<16x128xf32>
      %50 = arith.mulf %47, %49 : vector<16x128xf32>
      %cst_29 = arith.constant dense<0.000000e+00> : vector<16xf32>
      %51 = vector.multi_reduction <add>, %50, %cst_29 [1] : vector<16x128xf32> to vector<16xf32>
      %52 = vector.shape_cast %51 : vector<16xf32> to vector<16x1xf32>
      %cst_30 = arith.constant 1.280000e+02 : f32
      %53 = vector.broadcast %cst_30 : f32 to vector<16x1xf32>
      %54 = arith.divf %52, %53 : vector<16x1xf32>
      %55 = vector.broadcast %45 : vector<16x1xf32> to vector<16x128xf32>
      %56 = arith.subf %39, %55 : vector<16x128xf32>
      %cst_31 = arith.constant 9.99999974E-6 : f32
      %57 = vector.broadcast %cst_31 : f32 to vector<16x1xf32>
      %58 = arith.addf %54, %57 : vector<16x1xf32>
      %59 = math.rsqrt %58 : vector<16x1xf32>
      %60 = vector.broadcast %59 : vector<16x1xf32> to vector<16x128xf32>
      %61 = arith.mulf %56, %60 : vector<16x128xf32>
      %62 = vector.broadcast %40 : vector<1x128xf32> to vector<16x128xf32>
      %63 = arith.mulf %61, %62 : vector<16x128xf32>
      %64 = vector.broadcast %41 : vector<1x128xf32> to vector<16x128xf32>
      %65 = arith.addf %63, %64 : vector<16x128xf32>
      %66 = arith.truncf %65 : vector<16x128xf32> to vector<16x128xbf16>
      %c0_32 = arith.constant 0 : index
      %c0_33 = arith.constant 0 : index
      %67 = vector.load %arg15[%c0_32, %c0_33] : memref<16x128xbf16, #tpu.memory_space<vmem>>, vector<16x128xbf16>
      tpu.vector_store %arg15[%c0_32, %c0_33], %66 {strides = array<i32>} : memref<16x128xbf16, #tpu.memory_space<vmem>>, vector<16x128xbf16>,
      %c0_34 = arith.constant 0 : index
      %c0_35 = arith.constant 0 : index
      %68 = vector.load %arg5[%c0_34, %c0_35] : memref<128x128xbf16, #tpu.memory_space<vmem>>, vector<128x128xbf16>
      %cst_36 = arith.constant dense<0.000000e+00> : vector<16x128xf32>
      %69 = tpu.matmul %66, %68, %cst_36 {dimension_numbers = #tpu.dot_dimension_numbers<[1], [0], [0], [1], [0, 0, 1, 1], [], []>} : vector<16x128xbf16>, vector<128x128xbf16>, vector<16x128xf32> -> vector<16x128xf32>
      %c0_37 = arith.constant 0 : index
      %c0_38 = arith.constant 0 : index
      %70 = vector.load %arg6[%c0_37, %c0_38] : memref<1x128xf32, #tpu.memory_space<vmem>>, vector<1x128xf32>
      %71 = vector.broadcast %70 : vector<1x128xf32> to vector<16x128xf32>
      %72 = arith.addf %69, %71 : vector<16x128xf32>
      %73 = arith.mulf %72, %72 : vector<16x128xf32>
      %74 = arith.mulf %72, %73 : vector<16x128xf32>
      %cst_39 = arith.constant 4.471500e-02 : f32
      %75 = vector.broadcast %cst_39 : f32 to vector<16x128xf32>
      %76 = arith.mulf %75, %74 : vector<16x128xf32>
      %77 = arith.addf %72, %76 : vector<16x128xf32>
      %cst_40 = arith.constant 0.797884583 : f32
      %78 = vector.broadcast %cst_40 : f32 to vector<16x128xf32>
      %79 = arith.mulf %78, %77 : vector<16x128xf32>
      %80 = math.tanh %79 : vector<16x128xf32>
      %cst_41 = arith.constant 1.000000e+00 : f32
      %81 = vector.broadcast %cst_41 : f32 to vector<16x128xf32>
      %82 = arith.addf %81, %80 : vector<16x128xf32>
      %cst_42 = arith.constant 5.000000e-01 : f32
      %83 = vector.broadcast %cst_42 : f32 to vector<16x128xf32>
      %84 = arith.mulf %83, %82 : vector<16x128xf32>
      %85 = arith.mulf %72, %84 : vector<16x128xf32>
      %c0_43 = arith.constant 0 : index
      %c0_44 = arith.constant 0 : index
      %86 = vector.load %arg7[%c0_43, %c0_44] : memref<1x128xf32, #tpu.memory_space<vmem>>, vector<1x128xf32>
      %c0_45 = arith.constant 0 : index
      %c0_46 = arith.constant 0 : index
      %87 = vector.load %arg8[%c0_45, %c0_46] : memref<1x128xf32, #tpu.memory_space<vmem>>, vector<1x128xf32>
      %cst_47 = arith.constant dense<0.000000e+00> : vector<16xf32>
      %88 = vector.multi_reduction <add>, %85, %cst_47 [1] : vector<16x128xf32> to vector<16xf32>
      %89 = vector.shape_cast %88 : vector<16xf32> to vector<16x1xf32>
      %cst_48 = arith.constant 1.280000e+02 : f32
      %90 = vector.broadcast %cst_48 : f32 to vector<16x1xf32>
      %91 = arith.divf %89, %90 : vector<16x1xf32>
      %92 = vector.broadcast %91 : vector<16x1xf32> to vector<16x128xf32>
      %93 = arith.subf %85, %92 : vector<16x128xf32>
      %94 = vector.broadcast %91 : vector<16x1xf32> to vector<16x128xf32>
      %95 = arith.subf %85, %94 : vector<16x128xf32>
      %96 = arith.mulf %93, %95 : vector<16x128xf32>
      %cst_49 = arith.constant dense<0.000000e+00> : vector<16xf32>
      %97 = vector.multi_reduction <add>, %96, %cst_49 [1] : vector<16x128xf32> to vector<16xf32>
      %98 = vector.shape_cast %97 : vector<16xf32> to vector<16x1xf32>
      %cst_50 = arith.constant 1.280000e+02 : f32
      %99 = vector.broadcast %cst_50 : f32 to vector<16x1xf32>
      %100 = arith.divf %98, %99 : vector<16x1xf32>
      %101 = vector.broadcast %91 : vector<16x1xf32> to vector<16x128xf32>
      %102 = arith.subf %85, %101 : vector<16x128xf32>
      %cst_51 = arith.constant 9.99999974E-6 : f32
      %103 = vector.broadcast %cst_51 : f32 to vector<16x1xf32>
      %104 = arith.addf %100, %103 : vector<16x1xf32>
      %105 = math.rsqrt %104 : vector<16x1xf32>
      %106 = vector.broadcast %105 : vector<16x1xf32> to vector<16x128xf32>
      %107 = arith.mulf %102, %106 : vector<16x128xf32>
      %108 = vector.broadcast %86 : vector<1x128xf32> to vector<16x128xf32>
      %109 = arith.mulf %107, %108 : vector<16x128xf32>
      %110 = vector.broadcast %87 : vector<1x128xf32> to vector<16x128xf32>
      %111 = arith.addf %109, %110 : vector<16x128xf32>
      %112 = arith.truncf %111 : vector<16x128xf32> to vector<16x128xbf16>
      %c0_52 = arith.constant 0 : index
      %c0_53 = arith.constant 0 : index
      %113 = vector.load %arg9[%c0_52, %c0_53] : memref<8x8xbf16, #tpu.memory_space<vmem>>, vector<8x8xbf16>
      %114 = vector.extract_strided_slice %112 {offsets = [0, 0], sizes = [8, 128], strides = [1, 1]} : vector<16x128xbf16> to vector<8x128xbf16>
      %cst_54 = arith.constant dense<0.000000e+00> : vector<8x128xf32>
      %115 = tpu.matmul %113, %114, %cst_54 {dimension_numbers = #tpu.dot_dimension_numbers<[1], [0], [0], [1], [0, 0, 1, 1], [], []>} : vector<8x8xbf16>, vector<8x128xbf16>, vector<8x128xf32> -> vector<8x128xf32>
      %c0_55 = arith.constant 0 : index
      %c0_56 = arith.constant 0 : index
      %116 = vector.load %arg16[%c0_55, %c0_56] : memref<16x128xf32, #tpu.memory_space<vmem>>, vector<8x128xf32>
      tpu.vector_store %arg16[%c0_55, %c0_56], %115 {strides = array<i32>} : memref<16x128xf32, #tpu.memory_space<vmem>>, vector<8x128xf32>,
      %117 = vector.extract_strided_slice %112 {offsets = [8, 0], sizes = [8, 128], strides = [1, 1]} : vector<16x128xbf16> to vector<8x128xbf16>
      %cst_57 = arith.constant dense<0.000000e+00> : vector<8x128xf32>
      %118 = tpu.matmul %113, %117, %cst_57 {dimension_numbers = #tpu.dot_dimension_numbers<[1], [0], [0], [1], [0, 0, 1, 1], [], []>} : vector<8x8xbf16>, vector<8x128xbf16>, vector<8x128xf32> -> vector<8x128xf32>
      %c8 = arith.constant 8 : index
      %c0_58 = arith.constant 0 : index
      %119 = vector.load %arg16[%c8, %c0_58] : memref<16x128xf32, #tpu.memory_space<vmem>>, vector<8x128xf32>
      tpu.vector_store %arg16[%c8, %c0_58], %118 {strides = array<i32>} : memref<16x128xf32, #tpu.memory_space<vmem>>, vector<8x128xf32>,
      %cst_59 = arith.constant 0.000000e+00 : f32
      %120 = vector.broadcast %cst_59 : f32 to vector<16x128xf32>
      %c0_60 = arith.constant 0 : index
      %c0_61 = arith.constant 0 : index
      %121 = vector.load %arg17[%c0_60, %c0_61] : memref<16x128xf32, #tpu.memory_space<vmem>>, vector<16x128xf32>
      tpu.vector_store %arg17[%c0_60, %c0_61], %120 {strides = array<i32>} : memref<16x128xf32, #tpu.memory_space<vmem>>, vector<16x128xf32>,
    } else {
    }
    %c0 = arith.constant 0 : index
    %c0_1 = arith.constant 0 : index
    %3 = vector.load %arg15[%c0, %c0_1] : memref<16x128xbf16, #tpu.memory_space<vmem>>, vector<16x128xbf16>
    %c0_2 = arith.constant 0 : index
    %c0_3 = arith.constant 0 : index
    %4 = vector.load %arg10[%c0_2, %c0_3] : memref<128x128xbf16, #tpu.memory_space<vmem>>, vector<128x128xbf16>
    %cst = arith.constant dense<0.000000e+00> : vector<16x128xf32>
    %5 = tpu.matmul %3, %4, %cst {dimension_numbers = #tpu.dot_dimension_numbers<[1], [0], [0], [1], [0, 0, 1, 1], [], []>} : vector<16x128xbf16>, vector<128x128xbf16>, vector<16x128xf32> -> vector<16x128xf32>
    %c0_4 = arith.constant 0 : index
    %c0_5 = arith.constant 0 : index
    %6 = vector.load %arg11[%c0_4, %c0_5] : memref<1x128xf32, #tpu.memory_space<vmem>>, vector<1x128xf32>
    %7 = vector.broadcast %6 : vector<1x128xf32> to vector<16x128xf32>
    %8 = arith.addf %5, %7 : vector<16x128xf32>
    %9 = arith.mulf %8, %8 : vector<16x128xf32>
    %10 = arith.mulf %8, %9 : vector<16x128xf32>
    %cst_6 = arith.constant 4.471500e-02 : f32
    %11 = vector.broadcast %cst_6 : f32 to vector<16x128xf32>
    %12 = arith.mulf %11, %10 : vector<16x128xf32>
    %13 = arith.addf %8, %12 : vector<16x128xf32>
    %cst_7 = arith.constant 0.797884583 : f32
    %14 = vector.broadcast %cst_7 : f32 to vector<16x128xf32>
    %15 = arith.mulf %14, %13 : vector<16x128xf32>
    %16 = math.tanh %15 : vector<16x128xf32>
    %cst_8 = arith.constant 1.000000e+00 : f32
    %17 = vector.broadcast %cst_8 : f32 to vector<16x128xf32>
    %18 = arith.addf %17, %16 : vector<16x128xf32>
    %cst_9 = arith.constant 5.000000e-01 : f32
    %19 = vector.broadcast %cst_9 : f32 to vector<16x128xf32>
    %20 = arith.mulf %19, %18 : vector<16x128xf32>
    %21 = arith.mulf %8, %20 : vector<16x128xf32>
    %22 = arith.truncf %21 : vector<16x128xf32> to vector<16x128xbf16>
    %c128_i32 = arith.constant 128 : i32
    %23 = arith.muli %arg1, %c128_i32 : i32
    %24 = tpu.assume_multiple %23, 128 : i32
    %c0_10 = arith.constant 0 : index
    %25 = arith.index_cast %24 : i32 to index
    %26 = vector.load %arg16[%c0_10, %25] : memref<16x128xf32, #tpu.memory_space<vmem>>, vector<16x128xf32>
    %27 = arith.extf %22 : vector<16x128xbf16> to vector<16x128xf32>
    %28 = arith.mulf %27, %26 : vector<16x128xf32>
    %29 = arith.truncf %28 : vector<16x128xf32> to vector<16x128xbf16>
    %c0_11 = arith.constant 0 : index
    %c0_12 = arith.constant 0 : index
    %30 = vector.load %arg17[%c0_11, %c0_12] : memref<16x128xf32, #tpu.memory_space<vmem>>, vector<16x128xf32>
    %c0_13 = arith.constant 0 : index
    %c0_14 = arith.constant 0 : index
    %31 = vector.load %arg12[%c0_13, %c0_14] : memref<128x128xbf16, #tpu.memory_space<vmem>>, vector<128x128xbf16>
    %cst_15 = arith.constant dense<0.000000e+00> : vector<16x128xf32>
    %32 = tpu.matmul %29, %31, %cst_15 {dimension_numbers = #tpu.dot_dimension_numbers<[1], [0], [0], [1], [0, 0, 1, 1], [], []>} : vector<16x128xbf16>, vector<128x128xbf16>, vector<16x128xf32> -> vector<16x128xf32>
    %33 = arith.addf %30, %32 : vector<16x128xf32>
    %c0_16 = arith.constant 0 : index
    %c0_17 = arith.constant 0 : index
    %34 = vector.load %arg17[%c0_16, %c0_17] : memref<16x128xf32, #tpu.memory_space<vmem>>, vector<16x128xf32>
    tpu.vector_store %arg17[%c0_16, %c0_17], %33 {strides = array<i32>} : memref<16x128xf32, #tpu.memory_space<vmem>>, vector<16x128xf32>,
    %c0_i32_18 = arith.constant 0 : i32
    %35 = arith.cmpi eq, %arg1, %c0_i32_18 : i32
    %36 = arith.extui %35 : i1 to i32
    %c0_i32_19 = arith.constant 0 : i32
    %37 = arith.cmpi ne, %36, %c0_i32_19 : i32
    scf.if %37 {
      %c0_20 = arith.constant 0 : index
      %c0_21 = arith.constant 0 : index
      %38 = vector.load %arg17[%c0_20, %c0_21] : memref<16x128xf32, #tpu.memory_space<vmem>>, vector<16x128xf32>
      %c0_22 = arith.constant 0 : index
      %c0_23 = arith.constant 0 : index
      %39 = vector.load %arg13[%c0_22, %c0_23] : memref<1x128xf32, #tpu.memory_space<vmem>>, vector<1x128xf32>
      %40 = vector.broadcast %39 : vector<1x128xf32> to vector<16x128xf32>
      %41 = arith.addf %38, %40 : vector<16x128xf32>
      %c0_24 = arith.constant 0 : index
      %c0_25 = arith.constant 0 : index
      %c0_26 = arith.constant 0 : index
      %42 = vector.load %arg2[%c0_24, %c0_25, %c0_26] : memref<2x8x128xf32, #tpu.memory_space<vmem>>, vector<2x8x128xf32>
      %43 = vector.shape_cast %42 : vector<2x8x128xf32> to vector<16x128xf32>
      %44 = arith.addf %41, %43 : vector<16x128xf32>
      %45 = vector.shape_cast %44 : vector<16x128xf32> to vector<2x8x128xf32>
      %c0_27 = arith.constant 0 : index
      %c0_28 = arith.constant 0 : index
      %c0_29 = arith.constant 0 : index
      %46 = vector.load %arg14[%c0_27, %c0_28, %c0_29] : memref<2x8x128xf32, #tpu.memory_space<vmem>>, vector<2x8x128xf32>
      tpu.vector_store %arg14[%c0_27, %c0_28, %c0_29], %45 {strides = array<i32>} : memref<2x8x128xf32, #tpu.memory_space<vmem>>, vector<2x8x128xf32>,
    } else {
    }
    return
  }
  func.func @transform_0(%arg0: i32, %arg1: i32) -> (i32, i32, i32) {
    %c0_i32 = arith.constant 0 : i32
    %c0_i32_0 = arith.constant 0 : i32
    %c0_i32_1 = arith.constant 0 : i32
    return %arg0, %c0_i32, %c0_i32_0 : i32, i32, i32
  }
  func.func @transform_1(%arg0: i32, %arg1: i32) -> (i32, i32) {
    %c0_i32 = arith.constant 0 : i32
    %c0_i32_0 = arith.constant 0 : i32
    %c0_i32_1 = arith.constant 0 : i32
    return %c0_i32, %c0_i32_0 : i32, i32
  }
  func.func @transform_2(%arg0: i32, %arg1: i32) -> (i32, i32) {
    %c0_i32 = arith.constant 0 : i32
    %c0_i32_0 = arith.constant 0 : i32
    %c0_i32_1 = arith.constant 0 : i32
    return %c0_i32, %c0_i32_0 : i32, i32
  }
  func.func @transform_3(%arg0: i32, %arg1: i32) -> (i32, i32) {
    %c0_i32 = arith.constant 0 : i32
    %c0_i32_0 = arith.constant 0 : i32
    %c0_i32_1 = arith.constant 0 : i32
    return %c0_i32, %c0_i32_0 : i32, i32
  }
  func.func @transform_4(%arg0: i32, %arg1: i32) -> (i32, i32) {
    %c0_i32 = arith.constant 0 : i32
    %c0_i32_0 = arith.constant 0 : i32
    %c0_i32_1 = arith.constant 0 : i32
    return %c0_i32, %c0_i32_0 : i32, i32
  }
  func.func @transform_5(%arg0: i32, %arg1: i32) -> (i32, i32) {
    %c0_i32 = arith.constant 0 : i32
    %c0_i32_0 = arith.constant 0 : i32
    %c0_i32_1 = arith.constant 0 : i32
    return %c0_i32, %c0_i32_0 : i32, i32
  }
  func.func @transform_6(%arg0: i32, %arg1: i32) -> (i32, i32) {
    %c0_i32 = arith.constant 0 : i32
    %c0_i32_0 = arith.constant 0 : i32
    %c0_i32_1 = arith.constant 0 : i32
    return %c0_i32, %c0_i32_0 : i32, i32
  }
  func.func @transform_7(%arg0: i32, %arg1: i32) -> (i32, i32) {
    %c0_i32 = arith.constant 0 : i32
    %c0_i32_0 = arith.constant 0 : i32
    %c0_i32_1 = arith.constant 0 : i32
    return %c0_i32, %c0_i32_0 : i32, i32
  }
  func.func @transform_8(%arg0: i32, %arg1: i32) -> (i32, i32) {
    %c0_i32 = arith.constant 0 : i32
    %c0_i32_0 = arith.constant 0 : i32
    return %c0_i32, %arg1 : i32, i32
  }
  func.func @transform_9(%arg0: i32, %arg1: i32) -> (i32, i32) {
    %c0_i32 = arith.constant 0 : i32
    %c0_i32_0 = arith.constant 0 : i32
    return %c0_i32, %arg1 : i32, i32
  }
  func.func @transform_10(%arg0: i32, %arg1: i32) -> (i32, i32) {
    %c0_i32 = arith.constant 0 : i32
    %c0_i32_0 = arith.constant 0 : i32
    return %arg1, %c0_i32 : i32, i32
  }
  func.func @transform_11(%arg0: i32, %arg1: i32) -> (i32, i32) {
    %c0_i32 = arith.constant 0 : i32
    %c0_i32_0 = arith.constant 0 : i32
    %c0_i32_1 = arith.constant 0 : i32
    return %c0_i32, %c0_i32_0 : i32, i32
  }
  func.func @transform_12(%arg0: i32, %arg1: i32) -> (i32, i32, i32) {
    %c0_i32 = arith.constant 0 : i32
    %c0_i32_0 = arith.constant 0 : i32
    %c0_i32_1 = arith.constant 0 : i32
    return %arg0, %c0_i32, %c0_i32_0 : i32, i32, i32
  }
}

</mosaic_0001>

<bundles_post_ra>
// kernel: tpu_custom_call.1
= control target key start
LH: loop header
LB: loop body
LE: loop exit
PB: predicated region body
PF: predicated region fallthrough
CT: control target
= control target key end

     0   :  { %17 = vsyncpa [#allocation6], 0  ;;  %s1247_s0 = inlined_call_operand.hbm [shape: f32[2,8,128], index: 0, kind: input, shape index: {}]   ;;  %s1248_s1 = inlined_call_operand.vmem [shape: f32[1,128], index: 1, kind: input, shape index: {}]   ;;  %s1249_s2 = inlined_call_operand.vmem [shape: f32[1,128], index: 2, kind: input, shape index: {}]   ;;  %s1250_s3 = inlined_call_operand.hbm [shape: bf16[128,128], index: 3, kind: input, shape index: {}]   ;;  %s1251_s4 = inlined_call_operand.vmem [shape: f32[1,128], index: 4, kind: input, shape index: {}]   ;;  %s1252_s5 = inlined_call_operand.vmem [shape: f32[1,128], index: 5, kind: input, shape index: {}]   ;;  %s1253_s6 = inlined_call_operand.vmem [shape: f32[1,128], index: 6, kind: input, shape index: {}]   ;;  %s1254_s7 = inlined_call_operand.vmem [shape: bf16[8,8], index: 7, kind: input, shape index: {}]   ;;  %s1255_s8 = inlined_call_operand.hbm [shape: bf16[128,128], index: 8, kind: input, shape index: {}]   ;;  %s1256_s9 = inlined_call_operand.vmem [shape: f32[1,128], index: 9, kind: input, shape index: {}]   ;;  %s1257_s10 = inlined_call_operand.hbm [shape: bf16[128,128], index: 10, kind: input, shape index: {}]   ;;  %s1258_s11 = inlined_call_operand.vmem [shape: f32[1,128], index: 11, kind: input, shape index: {}]   ;;  %s1259_s12 = inlined_call_operand.hbm [shape: f32[2,8,128], index: 12, kind: output, shape index: {}]  }
   0x1   :  { %18 = vsyncpa [#allocation9], 0 }
   0x2   :  { %19 = vsyncpa [#allocation12], 0 }
   0x3   :  { %20 = vsyncpa [#allocation7], 0  ;;  %s1015_s21 = smov [#allocation8]   ;;  %s897_s25 = scalar_lea.hbm %s1250_s3, 1024 }
   0x4   :  { %s42_s22 = sshll.u32 %s1015_s21, 4  ;;  %p898_p0 = scmp.ne.s32.totalorder %s1250_s3, %s897_s25  ;;  %s43_s22 = int_to_ptr.vmem [resolvable:$true] %s42_s22 }
   0x5   :  { %p901_p1 = scmp.lt.u32.totalorder %s897_s25, %s1250_s3 }
   0x7   :  { %p903_p2 = pnand %p901_p1, %p898_p0 }
   0x9   :  { %906 = shalt.err (!%p903_p2)
}
   0xa   :  { %s907_s30 = scalar_lea.vmem %s43_s22, 1024  ;;  %p912_p4 = scmp.lt.s32.totalorder %s43_s22, %s43_s22 }
   0xb   :  { %p908_p3 = scmp.ne.s32.totalorder %s43_s22, %s907_s30  ;;  %p913_p5 = scmp.lt.s32.totalorder %s907_s30, %s907_s30 }
   0xd   :  { %p914_p6 = por %p913_p5, %p912_p4 }
   0xf   :  { %p915_p7 = pnand %p914_p6, %p908_p3 }
  0x11   :  { %918 = shalt.err (!%p915_p7)
}
  0x12   :  { %s1016_s13 = smov 64   ;;  %s1017_s14 = smov 4  }
  0x13   :  { %48 = dma.hbm_to_vmem [thread:$0]  %s1250_s3, 1024, %s43_s22, [#allocation9], %s1016_s13, %s1016_s13, %s1017_s14  }
  0x14   :  { %s1018_s17 = smov [#allocation5]   ;;  %s919_s21 = scalar_lea.hbm %s1247_s0, 256 }
  0x15   :  { %s26_s18 = sshll.u32 %s1018_s17, 4  ;;  %p920_p8 = scmp.ne.s32.totalorder %s1247_s0, %s919_s21  ;;  %s27_s18 = int_to_ptr.vmem [resolvable:$true] %s26_s18 }
  0x16   :  { %p923_p9 = scmp.lt.u32.totalorder %s919_s21, %s1247_s0 }
  0x18   :  { %p925_p10 = pnand %p923_p9, %p920_p8 }
  0x1a   :  { %928 = shalt.err (!%p925_p10)
}
  0x1b   :  { %s929_s27 = scalar_lea.vmem %s27_s18, 256  ;;  %p934_p12 = scmp.lt.s32.totalorder %s27_s18, %s27_s18 }
  0x1c   :  { %p930_p11 = scmp.ne.s32.totalorder %s27_s18, %s929_s27  ;;  %p935_p13 = scmp.lt.s32.totalorder %s929_s27, %s929_s27 }
  0x1e   :  { %p936_p0 = por %p935_p13, %p934_p12 }
  0x20   :  { %p937_p1 = pnand %p936_p0, %p930_p11 }
  0x22   :  { %940 = shalt.err (!%p937_p1)
}
  0x23   :  { %s1019_s3 = smov 128   ;;  %s1020_s22 = smov 8  }
  0x24   :  { %32 = dma.hbm_to_vmem [thread:$0]  %s1247_s0, 256, %s27_s18, [#allocation6], %s1019_s3, %s1019_s3, %s1020_s22  }
  0x25   :  { %s1021_s30 = smov [#allocation10]   ;;  %s1022_s16 = smov [#allocation11]  }
  0x26   :  { %s62_s15 = sshll.u32 %s1021_s30, 4  ;;  %s76_s17 = sshll.u32 %s1022_s16, 4  ;;  %s63_s15 = int_to_ptr.vmem [resolvable:$true] %s62_s15  ;;  %s1121_s17 = int_to_ptr.vmem [resolvable:$true] %s76_s17 }
  0x27   :  { %s941_s21 = scalar_lea.hbm %s1255_s8, 1024 }
  0x28   :  { %p942_p2 = scmp.ne.s32.totalorder %s1255_s8, %s941_s21  ;;  %p945_p3 = scmp.lt.u32.totalorder %s941_s21, %s1255_s8 }
  0x2a   :  { %p947_p4 = pnand %p945_p3, %p942_p2 }
  0x2c   :  { %950 = shalt.err (!%p947_p4)
}
  0x2d   :  { %s951_s0 = scalar_lea.vmem %s63_s15, 1024  ;;  %p956_p6 = scmp.lt.s32.totalorder %s63_s15, %s63_s15 }
  0x2e   :  { %p952_p5 = scmp.ne.s32.totalorder %s63_s15, %s951_s0  ;;  %p957_p7 = scmp.lt.s32.totalorder %s951_s0, %s951_s0 }
  0x30   :  { %p958_p8 = por %p957_p7, %p956_p6 }
  0x32   :  { %p959_p9 = pnand %p958_p8, %p952_p5 }
  0x34   :  { %962 = shalt.err (!%p959_p9)
}
  0x35   :  { %68 = dma.hbm_to_vmem [thread:$0]  %s1255_s8, 1024, %s63_s15, [#allocation9], %s1016_s13, %s1016_s13, %s1017_s14  }
  0x36   :  { %s963_s30 = scalar_lea.hbm %s1257_s10, 1024 }
  0x37   :  { %p964_p10 = scmp.ne.s32.totalorder %s1257_s10, %s963_s30  ;;  %p967_p11 = scmp.lt.u32.totalorder %s963_s30, %s1257_s10 }
  0x39   :  { %p969_p12 = pnand %p967_p11, %p964_p10 }
  0x3b   :  { %972 = shalt.err (!%p969_p12)
}
  0x3c   :  { %s973_s23 = scalar_lea.vmem %s1121_s17, 1024  ;;  %p978_p0 = scmp.lt.s32.totalorder %s1121_s17, %s1121_s17 }
  0x3d   :  { %p974_p13 = scmp.ne.s32.totalorder %s1121_s17, %s973_s23  ;;  %p979_p1 = scmp.lt.s32.totalorder %s973_s23, %s973_s23 }
  0x3f   :  { %p980_p2 = por %p979_p1, %p978_p0 }
  0x41   :  { %p981_p3 = pnand %p980_p2, %p974_p13 }
  0x43   :  { %984 = shalt.err (!%p981_p3)
}
  0x44   :  { %82 = dma.hbm_to_vmem [thread:$0]  %s1257_s10, 1024, %s1121_s17, [#allocation12], %s1016_s13, %s1016_s13, %s1017_s14  }
  0x45   :  { %1007 = dma.done.wait [#allocation6], 256  }
  0x46   :  { %1008 = vsyncadd [#allocation6], 4294967040 }
  0x47   :  { %1009 = dma.done.wait [#allocation9], 2048  }
  0x48   :  { %1010 = vsyncadd [#allocation9], 4294965248 }
  0x49   :  { %1011 = dma.done.wait [#allocation12], 1024  }
  0x4a   :  { %1012 = vsyncadd [#allocation12], 4294966272  ;;  %v1158_v0 = vld [vmem:[#allocation5] sm:$0xff]  ;;  %v1160_v1 = vld [vmem:[#allocation5 + $0x8] sm:$0xff]  ;;  %v1023_v3 = vmov 0.0   ;;  %vm1024_vm0 = vmmov 0  }
  0x4b   :  { %106 = vadd.xlane.f32.xlu0 %v1158_v0  ;;  %v857_v2 = vld [vmem:[#allocation8] sm:$0xff]   ;;  %774 = vmatprep.subr.bf16.mxu0 %v1023_v3  ;;  %v858_v12 = vld [vmem:[#allocation8 + $0x8] sm:$0xff]   ;;  %v859_v13 = vld [vmem:[#allocation8 + $0x10] sm:$0xff]   ;;  %vm323_vm1 = vcmask 1043456   ;;  %vm319_vm2 = vcmask 64512   ;;  %s1025_s27 = smov [#allocation13]  }
  0x4c   :  { %794 = vmatprep.subr.bf16.mxu1 %v1023_v3  ;;  %775 = vmatpush3.bf16.msra.mxu0 %v857_v2  ;;  %v860_v14 = vld [vmem:[#allocation8 + $0x18] sm:$0xff]   ;;  %v861_v15 = vld [vmem:[#allocation8 + $0x20] sm:$0xff]   ;;  %v862_v16 = vld [vmem:[#allocation8 + $0x28] sm:$0xff]   ;;  %s695_s28 = sshll.u32 %s1025_s27, 4  ;;  %s696_s28 = int_to_ptr.vmem [resolvable:$true] %s695_s28 }
  0x4d   :  { %776 = vmatprep.subr.bf16.mxu0 %v1023_v3  ;;  %790 = vmatprep.mubr.msk.bf16.mxu0 %vm1024_vm0, %v1023_v3  ;;  %v863_v17 = vld [vmem:[#allocation8 + $0x30] sm:$0xff]   ;;  %v864_v18 = vld [vmem:[#allocation8 + $0x38] sm:$0xff]   ;;  %s985_s29 = scalar_lea.vmem %s696_s28, 256  ;;  %p990_p5 = scmp.lt.s32.totalorder %s696_s28, %s696_s28 }
  0x4e   :  { %796 = vmatprep.mubr.msk.bf16.mxu1 %vm1024_vm0, %v1023_v3  ;;  %v710_v27 = vld [vmem:[%s1248_s1] ss:$0 sm:$0xff]  ;;  %p986_p4 = scmp.ne.s32.totalorder %s696_s28, %s985_s29  ;;  %p991_p6 = scmp.lt.s32.totalorder %s985_s29, %s985_s29 }
  0x4f   :  { %108 = vadd.xlane.f32.xlu0 %v1160_v1  ;;  %v711_v31 = vld [vmem:[%s1249_s2] ss:$0 sm:$0xff] }
  0x50   :  { %777 = vmatpush3.bf16.msra.mxu0 %v858_v12  ;;  %v712_v36 = vld [vmem:[%s1251_s4] ss:$0 sm:$0xff]  ;;  %p992_p7 = por %p991_p6, %p990_p5 }
  0x51   :  { %778 = vmatprep.subr.bf16.mxu0 %v1023_v3 }
  0x52   :  { %p993_p8 = pnand %p992_p7, %p986_p4 }
  0x54   :  { %779 = vmatpush3.bf16.msra.mxu0 %v859_v13 }
  0x55   :  { %780 = vmatprep.subr.bf16.mxu0 %v1023_v3 }
  0x58   :  { %781 = vmatpush3.bf16.msra.mxu0 %v860_v14 }
  0x59   :  { %782 = vmatprep.subr.bf16.mxu0 %v1023_v3 }
  0x5c   :  { %783 = vmatpush3.bf16.msra.mxu0 %v861_v15  ;;  %v721_v15 = vld [vmem:[%s1252_s5] ss:$0 sm:$0xff] }
  0x5d   :  { %784 = vmatprep.subr.bf16.mxu0 %v1023_v3 }
  0x60   :  { %785 = vmatpush3.bf16.msra.mxu0 %v862_v16 }
  0x61   :  { %786 = vmatprep.subr.bf16.mxu0 %v1023_v3 }
  0x64   :  { %787 = vmatpush3.bf16.msra.mxu0 %v863_v17 }
  0x65   :  { %788 = vmatprep.subr.bf16.mxu0 %v1023_v3 }
  0x68   :  { %789 = vmatpush3.bf16.msra.mxu0 %v864_v18 }
  0x69   :  { %826 = vmatprep.subr.bf16.mxu0 %v1023_v3 }
  0xd8   :  { %v107_v4 = vpop.xlane.xlu0 %106 }
  0xd9   :  { %v111_v5 = vmul.f32 0.0078125, %v107_v4 }
  0xdb   :  { %v113_v6 = vsub.f32 %v1158_v0, %v111_v5 }
  0xdc   :  { %v109_v7 = vpop.xlane.xlu0 %108 }
  0xdd   :  { %v112_v8 = vmul.f32 0.0078125, %v109_v7  ;;  %v115_v9 = vmul.f32 %v113_v6, %v113_v6 }
  0xdf   :  { %v114_v10 = vsub.f32 %v1160_v1, %v112_v8  ;;  %117 = vadd.xlane.f32.xlu1 %v115_v9 }
  0xe1   :  { %v116_v11 = vmul.f32 %v114_v10, %v114_v10 }
  0xe3   :  { %119 = vadd.xlane.f32.xlu1 %v116_v11 }
 0x16c   :  { %v118_v19 = vpop.xlane.xlu1 %117 }
 0x16d   :  { %v121_v20 = vmul.f32 0.0078125, %v118_v19 }
 0x16f   :  { %v123_v21 = vadd.f32 1e-05, %v121_v20  ;;  %v722_v20 = vld [vmem:[%s1253_s6] ss:$0 sm:$0xff] }
 0x170   :  { %v120_v22 = vpop.xlane.xlu1 %119 }
 0x171   :  { %881 = vrsqrt.f32 %v123_v21  ;;  %v122_v23 = vmul.f32 0.0078125, %v120_v22 }
 0x173   :  { %v124_v24 = vadd.f32 1e-05, %v122_v23 }
 0x175   :  { %883 = vrsqrt.f32 %v124_v24 }
 0x17b   :  { %v882_v25 = vpop.eup %881 }
 0x17c   :  { %v127_v26 = vmul.f32 %v882_v25, %v113_v6 }
 0x17e   :  { %v135_v30 = vmul.f32 %v710_v27, %v127_v26 }
 0x17f   :  { %v884_v28 = vpop.eup %883 }
 0x180   :  { %v128_v29 = vmul.f32 %v884_v28, %v114_v10  ;;  %v143_v33 = vadd.f32 %v711_v31, %v135_v30  ;;  %v866_v30 = vld [vmem:[#allocation10 + $0x8] sm:$0xff]  }
 0x182   :  { %v136_v32 = vmul.f32 %v710_v27, %v128_v29  ;;  %v318_v27 = vld [vmem:[%s1254_s7] sm:$0xf]  ;;  %v865_v29 = vld [vmem:[#allocation10] sm:$0xff]  }
 0x184   :  { %v144_v34 = vadd.f32 %v711_v31, %v136_v32  ;;  %v867_v31 = vld [vmem:[#allocation10 + $0x10] sm:$0xff]   ;;  %v868_v32 = vld [vmem:[#allocation10 + $0x18] sm:$0xff]  }
 0x186   :  { %v1186_v35 = vpack.c.bf16 %v144_v34, %v143_v33  ;;  %v869_v33 = vld [vmem:[#allocation10 + $0x20] sm:$0xff]   ;;  %v870_v34 = vld [vmem:[#allocation10 + $0x28] sm:$0xff]  }
 0x188   :  { %791 = vmatmul.mubr.bf16.vlgmr.msra.gmra.mrb[0].mxu0 %v1186_v35 }
 0x189   :  { %842 = vmatprep.mubr.msk.bf16.mxu0 %vm1024_vm0, %v1023_v3 }
 0x25b   :  { %v252_v37 = vpop.f32.mrb[0].mxu0 }
 0x25c   :  { %v253_v38 = vadd.f32 %v712_v36, %v252_v37  ;;  %v792_v39 = vpop.f32.mrb[1].mxu0  ;;  %v872_v37 = vld [vmem:[#allocation10 + $0x38] sm:$0xff]  }
 0x25d   :  { %v255_v40 = vpop.f32.mrb[2].mxu0  ;;  %v874_v39 = vld [vmem:[#allocation11 + $0x8] sm:$0xff]  }
 0x25e   :  { %v259_v41 = vmul.f32 %v253_v38, %v253_v38  ;;  %v256_v42 = vadd.f32 %v712_v36, %v255_v40  ;;  %v793_v43 = vpop.f32.mrb[3].mxu0  ;;  %v871_v36 = vld [vmem:[#allocation10 + $0x30] sm:$0xff]  }
 0x25f   :  { %v875_v40 = vld [vmem:[#allocation11 + $0x10] sm:$0xff]  }
 0x260   :  { %v261_v44 = vmul.f32 %v259_v41, %v253_v38  ;;  %v260_v45 = vmul.f32 %v256_v42, %v256_v42  ;;  %v876_v41 = vld [vmem:[#allocation11 + $0x18] sm:$0xff]   ;;  %v879_v43 = vld [vmem:[#allocation11 + $0x30] sm:$0xff]  }
 0x262   :  { %v263_v46 = vmul.f32 0.044715, %v261_v44  ;;  %v262_v47 = vmul.f32 %v260_v45, %v256_v42  ;;  %v880_v44 = vld [vmem:[#allocation11 + $0x38] sm:$0xff]  }
 0x264   :  { %v264_v48 = vmul.f32 0.044715, %v262_v47  ;;  %v265_v49 = vadd.f32 %v263_v46, %v253_v38 }
 0x266   :  { %v267_v50 = vmul.f32 0.7978846, %v265_v49  ;;  %v266_v51 = vadd.f32 %v264_v48, %v256_v42 }
 0x268   :  { %885 = vtanh.f32 %v267_v50  ;;  %v268_v52 = vmul.f32 0.7978846, %v266_v51 }
 0x26a   :  { %887 = vtanh.f32 %v268_v52 }
 0x272   :  { %v886_v53 = vpop.eup %885 }
 0x273   :  { %v271_v54 = vadd.f32 1.0, %v886_v53  ;;  %v725_v53 = vld [vmem:[%s1256_s9] ss:$0 sm:$0xff] }
 0x274   :  { %v888_v55 = vpop.eup %887 }
 0x275   :  { %v273_v56 = vmul.f32 0.5, %v271_v54  ;;  %v272_v57 = vadd.f32 1.0, %v888_v55 }
 0x277   :  { %v275_v58 = vmul.f32 %v273_v56, %v253_v38  ;;  %v274_v59 = vmul.f32 0.5, %v272_v57  ;;  %v873_v38 = vld [vmem:[#allocation11] sm:$0xff]  }
 0x278   :  { %827 = vmatpush3.bf16.msra.mxu0 %v873_v38 }
 0x279   :  { %279 = vadd.xlane.f32.xlu0 %v275_v58  ;;  %v276_v60 = vmul.f32 %v274_v59, %v256_v42  ;;  %828 = vmatprep.subr.bf16.mxu0 %v1023_v3  ;;  %v877_v42 = vld [vmem:[#allocation11 + $0x20] sm:$0xff]  }
 0x27b   :  { %281 = vadd.xlane.f32.xlu1 %v276_v60 }
 0x27c   :  { %829 = vmatpush3.bf16.msra.mxu0 %v874_v39 }
 0x27d   :  { %830 = vmatprep.subr.bf16.mxu0 %v1023_v3 }
 0x280   :  { %831 = vmatpush3.bf16.msra.mxu0 %v875_v40 }
 0x281   :  { %832 = vmatprep.subr.bf16.mxu0 %v1023_v3 }
 0x284   :  { %833 = vmatpush3.bf16.msra.mxu0 %v876_v41 }
 0x285   :  { %834 = vmatprep.subr.bf16.mxu0 %v1023_v3 }
 0x288   :  { %835 = vmatpush3.bf16.msra.mxu0 %v877_v42 }
 0x289   :  { %836 = vmatprep.subr.bf16.mxu0 %v1023_v3 }
 0x306   :  { %v280_v61 = vpop.xlane.xlu0 %279 }
 0x307   :  { %v283_v62 = vmul.f32 0.0078125, %v280_v61 }
 0x308   :  { %v282_v63 = vpop.xlane.xlu1 %281 }
 0x309   :  { %v285_v2 = vsub.f32 %v275_v58, %v283_v62  ;;  %v284_v4 = vmul.f32 0.0078125, %v282_v63 }
 0x30b   :  { %v286_v5 = vsub.f32 %v276_v60, %v284_v4  ;;  %v287_v6 = vmul.f32 %v285_v2, %v285_v2 }
 0x30d   :  { %289 = vadd.xlane.f32.xlu0 %v287_v6  ;;  %v288_v7 = vmul.f32 %v286_v5, %v286_v5 }
 0x30f   :  { %291 = vadd.xlane.f32.xlu1 %v288_v7 }
 0x39a   :  { %v290_v8 = vpop.xlane.xlu0 %289 }
 0x39b   :  { %v293_v9 = vmul.f32 0.0078125, %v290_v8 }
 0x39c   :  { %v292_v10 = vpop.xlane.xlu1 %291 }
 0x39d   :  { %v295_v11 = vadd.f32 1e-05, %v293_v9  ;;  %v294_v12 = vmul.f32 0.0078125, %v292_v10 }
 0x39f   :  { %889 = vrsqrt.f32 %v295_v11  ;;  %v296_v13 = vadd.f32 1e-05, %v294_v12 }
 0x3a1   :  { %891 = vrsqrt.f32 %v296_v13 }
 0x3a9   :  { %v890_v14 = vpop.eup %889 }
 0x3aa   :  { %v299_v16 = vmul.f32 %v890_v14, %v285_v2 }
 0x3ab   :  { %v892_v17 = vpop.eup %891 }
 0x3ac   :  { %v300_v18 = vmul.f32 %v892_v17, %v286_v5  ;;  %v307_v19 = vmul.f32 %v721_v15, %v299_v16 }
 0x3ae   :  { %v308_v21 = vmul.f32 %v721_v15, %v300_v18  ;;  %v315_v22 = vadd.f32 %v722_v20, %v307_v19 }
 0x3b0   :  { %v316_v23 = vadd.f32 %v722_v20, %v308_v21 }
 0x3b2   :  { %v317_v24 = vpack.c.bf16 %v316_v23, %v315_v22  ;;  %v742_v22 = vld [vmem:[%s1258_s11] ss:$0 sm:$0xff] }
 0x3b4   :  { %v325_v25 = vsel %vm323_vm1, %v317_v24, 0  ;;  %v369_v26 = vrot.slane %v317_v24, 4 }
 0x3b5   :  { %795 = vmatpush3.bf16.msra.mxu1 %v325_v25 }
 0x3b6   :  { %800 = vmatprep.subr.bf16.mxu1 %v1023_v3  ;;  %v371_v28 = vsel %vm323_vm1, %v369_v26, 0 }
 0x3b8   :  { %797 = vmatmul.mubr.msk.bf16.vlgmr.msra.gmra.mrb[0].mxu1 %vm319_vm2, %v318_v27 }
 0x3b9   :  { %801 = vmatpush3.bf16.msra.mxu1 %v371_v28  ;;  %802 = vmatprep.mubr.msk.bf16.mxu1 %vm1024_vm0, %v1023_v3 }
 0x3ba   :  { %806 = vmatprep.subr.bf16.mxu1 %v1023_v3 }
 0x3c0   :  { %803 = vmatmul.mubr.msk.bf16.vlgmr.msra.gmra.mrb[4].mxu1 %vm319_vm2, %v318_v27 }
 0x3c1   :  { %807 = vmatpush3.bf16.msra.mxu1 %v865_v29  ;;  %822 = vmatprep.mubr.msk.bf16.mxu1 %vm1024_vm0, %v1023_v3 }
 0x3c2   :  { %808 = vmatprep.subr.bf16.mxu1 %v1023_v3 }
 0x3c5   :  { %809 = vmatpush3.bf16.msra.mxu1 %v866_v30 }
 0x3c6   :  { %810 = vmatprep.subr.bf16.mxu1 %v1023_v3 }
 0x3c9   :  { %811 = vmatpush3.bf16.msra.mxu1 %v867_v31 }
 0x3ca   :  { %812 = vmatprep.subr.bf16.mxu1 %v1023_v3 }
 0x3cd   :  { %813 = vmatpush3.bf16.msra.mxu1 %v868_v32 }
 0x3ce   :  { %814 = vmatprep.subr.bf16.mxu1 %v1023_v3 }
 0x3d1   :  { %815 = vmatpush3.bf16.msra.mxu1 %v869_v33 }
 0x3d2   :  { %816 = vmatprep.subr.bf16.mxu1 %v1023_v3 }
 0x3d5   :  { %817 = vmatpush3.bf16.msra.mxu1 %v870_v34 }
 0x3d6   :  { %818 = vmatprep.subr.bf16.mxu1 %v1023_v3 }
 0x3d9   :  { %819 = vmatpush3.bf16.msra.mxu1 %v871_v36 }
 0x3da   :  { %820 = vmatprep.subr.bf16.mxu1 %v1023_v3 }
 0x3dd   :  { %821 = vmatpush3.bf16.msra.mxu1 %v872_v37 }
 0x3e0   :  { %823 = vmatmul.mubr.bf16.vlgmr.msra.gmra.mrb[8].mxu1 %v1186_v35  ;;  %v878_v35 = vld [vmem:[#allocation11 + $0x28] sm:$0xff]  }
 0x3e1   :  { %837 = vmatpush3.bf16.msra.mxu0 %v878_v35 }
 0x3e2   :  { %838 = vmatprep.subr.bf16.mxu0 %v1023_v3 }
 0x3e5   :  { %839 = vmatpush3.bf16.msra.mxu0 %v879_v43 }
 0x3e6   :  { %840 = vmatprep.subr.bf16.mxu0 %v1023_v3 }
 0x3e9   :  { %841 = vmatpush3.bf16.msra.mxu0 %v880_v44 }
 0x48b   :  { %v361_v45 = vpop.f32.mrb[0].mxu1 }
 0x48c   :  { %v798_v46 = vpop.f32.mrb[1].mxu1 }
 0x48d   :  { %v364_v47 = vpop.f32.mrb[2].mxu1 }
 0x48e   :  { %v799_v48 = vpop.f32.mrb[3].mxu1 }
 0x493   :  { %v407_v49 = vpop.f32.mrb[4].mxu1 }
 0x494   :  { %v804_v50 = vpop.f32.mrb[5].mxu1 }
 0x495   :  { %v410_v51 = vpop.f32.mrb[6].mxu1 }
 0x496   :  { %v805_v52 = vpop.f32.mrb[7].mxu1 }
 0x4b3   :  { %v522_v54 = vpop.f32.mrb[8].mxu1 }
 0x4b4   :  { %v523_v55 = vadd.f32 %v725_v53, %v522_v54  ;;  %v824_v56 = vpop.f32.mrb[9].mxu1 }
 0x4b5   :  { %v525_v57 = vpop.f32.mrb[10].mxu1 }
 0x4b6   :  { %v529_v58 = vmul.f32 %v523_v55, %v523_v55  ;;  %v526_v59 = vadd.f32 %v725_v53, %v525_v57  ;;  %v825_v3 = vpop.f32.mrb[11].mxu1 }
 0x4b8   :  { %v531_v60 = vmul.f32 %v529_v58, %v523_v55  ;;  %v530_v61 = vmul.f32 %v526_v59, %v526_v59 }
 0x4ba   :  { %v533_v62 = vmul.f32 0.044715, %v531_v60  ;;  %v532_v63 = vmul.f32 %v530_v61, %v526_v59 }
 0x4bc   :  { %v535_v2 = vadd.f32 %v533_v62, %v523_v55  ;;  %v534_v4 = vmul.f32 0.044715, %v532_v63 }
 0x4be   :  { %v537_v5 = vmul.f32 0.7978846, %v535_v2  ;;  %v536_v6 = vadd.f32 %v534_v4, %v526_v59 }
 0x4c0   :  { %893 = vtanh.f32 %v537_v5  ;;  %v538_v7 = vmul.f32 0.7978846, %v536_v6 }
 0x4c2   :  { %895 = vtanh.f32 %v538_v7 }
 0x4ca   :  { %v894_v8 = vpop.eup %893 }
 0x4cb   :  { %v541_v9 = vadd.f32 1.0, %v894_v8 }
 0x4cc   :  { %v896_v10 = vpop.eup %895 }
 0x4cd   :  { %v543_v11 = vmul.f32 0.5, %v541_v9  ;;  %v542_v12 = vadd.f32 1.0, %v896_v10 }
 0x4cf   :  { %v544_v13 = vmul.f32 0.5, %v542_v12  ;;  %v545_v14 = vmul.f32 %v543_v11, %v523_v55 }
 0x4d1   :  { %v546_v15 = vmul.f32 %v544_v13, %v526_v59 }
 0x4d3   :  { %v547_v16 = vpack.c.bf16 %v546_v15, %v545_v14 }
 0x4d5   :  { %v554_v17 = vunpack.c.l.bf16 %v547_v16  ;;  %v555_v18 = vunpack.c.h.bf16 %v547_v16 }
 0x4d7   :  { %v556_v19 = vmul.f32 %v554_v17, %v361_v45  ;;  %v557_v20 = vmul.f32 %v555_v18, %v407_v49 }
 0x4d9   :  { %v558_v21 = vpack.c.bf16 %v557_v20, %v556_v19 }
 0x4db   :  { %843 = vmatmul.mubr.bf16.vlgmr.msra.gmra.mrb[4].mxu0 %v558_v21 }
 0x5ae   :  { %v659_v23 = vpop.f32.mrb[4].mxu0 }
 0x5af   :  { %v682_v24 = vadd.f32 %v742_v22, %v659_v23  ;;  %v844_v25 = vpop.f32.mrb[5].mxu0 }
 0x5b0   :  { %v662_v26 = vpop.f32.mrb[6].mxu0 }
 0x5b1   :  { %v686_v27 = vadd.f32 %v682_v24, %v1158_v0  ;;  %v683_v28 = vadd.f32 %v742_v22, %v662_v26  ;;  %v845_v29 = vpop.f32.mrb[7].mxu0 }
 0x5b3   :  { %688 = vst [vmem:[#allocation13] sm:$0xff] %v686_v27  ;;  %v687_v30 = vadd.f32 %v683_v28, %v1160_v1 }
 0x5b5   :  { %689 = vst [vmem:[#allocation13 + $0x8] sm:$0xff] %v687_v30 }
 0x5b6   :  { %996 = shalt.err (!%p993_p8)
}
 0x5b7   :  { %s997_s16 = scalar_lea.hbm %s1259_s12, 256 }
 0x5b8   :  { %p998_p9 = scmp.ne.s32.totalorder %s1259_s12, %s997_s16  ;;  %p1001_p10 = scmp.lt.u32.totalorder %s997_s16, %s1259_s12 }
 0x5ba   :  { %p1003_p11 = pnand %p1001_p10, %p998_p9 }
 0x5bc   :  { %1006 = shalt.err (!%p1003_p11)
}
 0x5bd   :  { %701 = dma.vmem_to_hbm [thread:$0]  %s696_s28, 256, %s1259_s12, [#allocation7], %s1019_s3, %s1019_s3, %s1020_s22  }
 0x5be   :  { %1013 = dma.done.wait [#allocation7], 256  }
 0x5bf   :  { %1014 = vsyncadd [#allocation7], 4294967040 }
 0x5c0   :  { %705 = vsyncpa [#allocation6], 1 }
 0x5c1   :  { %706 = vsyncpa [#allocation9], 1 }
 0x5c2   :  { %707 = vsyncpa [#allocation12], 1 }
 0x5c3   :  { %708 = vsyncpa [#allocation7], 1 }

</bundles_post_ra>
